<compile_context>
chip_gen: v6e
topology: v6e:2x2x1
jax: 0.10.0
libtpu: 0.0.40
codegen_flags: <defaults>
</compile_context>

<pallas_src>
import jax
import jax.numpy as jnp
from jax import lax
from jax.experimental import pallas as pl
from jax.experimental.pallas import tpu as pltpu

LANES = 128        # vreg lane width
LANE_SHIFT = 7     # log2(LANES)

# One-time cached capability flag for pipeline_mode=pl.Buffered(1).
# None = unknown, True/False once probed.
_BUFFERED_TABLE_OK = [None]


def _round_up(x, m):
    return (x + m - 1) // m * m


# ----------------------------------------------------------------------------
# Kernel: range-restricted gather-select over a (chunks, sub, 128) table tile.
# ----------------------------------------------------------------------------
def _make_gather_kernel(sub, chunk_blk):
    """out[r, c] = table_flat[idx[r, c]]  (0 for out-of-range indices)."""

    def kernel(lo_ref, hi_ref, idx_ref, tbl_ref, out_ref):
        i = pl.program_id(0)                    # row-tile index
        k = pl.program_id(1)                    # table chunk-block index

        @pl.when(k == 0)
        def _init():
            out_ref[...] = jnp.zeros_like(out_ref)

        base = k * chunk_blk                    # first global chunk in this block
        lo = jnp.maximum(lo_ref[i], base)       # SMEM scalars -> loop bounds
        hi = jnp.minimum(hi_ref[i] + 1, base + chunk_blk)

        @pl.when(hi > lo)
        def _compute():
            idx = idx_ref[...]                              # (TR, 128) int32
            m = jnp.bitwise_and(idx, LANES - 1)             # lane within table row
            rrow = jnp.right_shift(idx, LANE_SHIFT)         # 128-wide table row

            def chunk_body(c, acc):
                chunk = tbl_ref[c - base].astype(jnp.float32)   # (sub, 128)
                for r in range(sub):                            # static unroll
                    row = jnp.broadcast_to(chunk[r:r + 1, :], idx.shape)
                    vals = jnp.take_along_axis(row, m, axis=-1,
                                               mode="promise_in_bounds")
                    acc = jnp.where(rrow == c * sub + r, vals, acc)
                return acc

            acc = lax.fori_loop(lo, hi, chunk_body,
                                out_ref[...].astype(jnp.float32))
            out_ref[...] = acc.astype(out_ref.dtype)

    return kernel


def _gather_call(lo_arr, hi_arr, ids2, tbl, *, tr, chunk_blk, n_k,
                 table_buffers, vmem_limit):
    rows_pad = ids2.shape[0]
    sub = tbl.shape[1]
    kernel = _make_gather_kernel(sub, chunk_blk)

    tbl_spec_kwargs = {}
    if table_buffers is not None:
        tbl_spec_kwargs["pipeline_mode"] = pl.Buffered(table_buffers)

    grid_spec = pltpu.PrefetchScalarGridSpec(
        num_scalar_prefetch=2,                  # lo_arr, hi_arr -> SMEM
        grid=(rows_pad // tr, n_k),
        in_specs=[
            pl.BlockSpec((tr, LANES), lambda i, k, lo, hi: (i, 0)),
            pl.BlockSpec((chunk_blk, sub, LANES),
                         lambda i, k, lo, hi: (k, 0, 0), **tbl_spec_kwargs),
        ],
        out_specs=pl.BlockSpec((tr, LANES), lambda i, k, lo, hi: (i, 0)),
    )

    return pl.pallas_call(
        kernel,
        out_shape=jax.ShapeDtypeStruct((rows_pad, LANES), tbl.dtype),
        grid_spec=grid_spec,
        compiler_params=pltpu.CompilerParams(
            dimension_semantics=("parallel", "arbitrary"),
            vmem_limit_bytes=int(vmem_limit),
        ),
    )(lo_arr, hi_arr, ids2, tbl)


# ----------------------------------------------------------------------------
# Public forward (NeuralArray.forward equivalent: data[ids]).
# ----------------------------------------------------------------------------
def neural_array_forward(data, ids, *, block_rows=1024):
    data = jnp.asarray(data)
    ids = jnp.asarray(ids)
    orig_shape = ids.shape
    dim = data.shape[0]

    if jnp.dtype(data.dtype).itemsize not in (1, 2, 4):
        # TODO(synk): 64-bit parameters have no native (8,128) tiling here.
        data = data.astype(jnp.float32)
    out_dtype = data.dtype
    itemsize = jnp.dtype(out_dtype).itemsize
    sub = 32 // itemsize                       # sublane packing: 8 / 16 / 32

    ids_flat = ids.reshape(-1).astype(jnp.int32)
    n = int(ids_flat.shape[0])
    if n == 0:
        return jnp.zeros(orig_shape, out_dtype)

    # PyTorch wraps negative indices in [-dim, 0).
    ids_flat = jnp.where(ids_flat < 0, ids_flat + dim, ids_flat)

    # ---- lane-dense (rows, 128) index / output layout -----------------------
    rows = pl.cdiv(n, LANES)
    rows_r = _round_up(rows, sub)
    # Prefer >= 2 grid steps so the idx/out streams actually pipeline and
    # v7x megacore gets work on both cores; cap tile at block_rows rows.
    tr = min(_round_up(block_rows, sub), max((rows_r // 2) // sub * sub, sub))
    rows_pad = _round_up(rows_r, tr)
    n_pad = rows_pad * LANES
    # Edge-pad so the padding does not widen the per-tile chunk range.
    ids2 = jnp.pad(ids_flat, (0, n_pad - n), mode="edge").reshape(rows_pad, LANES)

    # ---- table layout: (chunks, sub, 128), zero padded ----------------------
    chunk_elems = sub * LANES
    d_pad = _round_up(max(dim, 1), chunk_elems)
    n_chunks = d_pad // chunk_elems
    tbl_flat = jnp.pad(data, (0, d_pad - dim))

    # Per row tile min/max chunk index (scalar-prefetched into SMEM) so the
    # kernel only sweeps chunks that can actually be hit.
    chunk_shift = sub.bit_length() - 1
    cidx = jnp.right_shift(ids2, LANE_SHIFT + chunk_shift)
    cidx = cidx.reshape(rows_pad // tr, tr * LANES)
    lo_arr = jnp.min(cidx, axis=1).astype(jnp.int32)
    hi_arr = jnp.max(cidx, axis=1).astype(jnp.int32)

    # ---- per-generation VMEM budget -----------------------------------------
    try:
        vmem_cap = int(getattr(pltpu.get_tpu_info(), "vmem_capacity_bytes",
                               64 << 20))
    except Exception:
        vmem_cap = 64 << 20                    # conservative (v7x-sized)
    budget = int(vmem_cap * 0.8)

    chunk_bytes = chunk_elems * itemsize
    table_bytes = n_chunks * chunk_bytes
    tiles_bytes = 2 * tr * LANES * 4 + 2 * tr * LANES * itemsize
    slack = 2 << 20

    fits_double = 2 * table_bytes + tiles_bytes + slack <= budget
    fits_single = table_bytes + tiles_bytes + slack <= budget

    # Streamed sizing (double-buffered table chunk-blocks along grid axis k),
    # used when the whole table cannot stay VMEM-resident.
    avail_tbl = max(budget - tiles_bytes - slack, 2 * chunk_bytes)
    chunk_blk_s = int(max(1, min(n_chunks, avail_tbl // (2 * chunk_bytes))))
    n_k_s = int(pl.cdiv(n_chunks, chunk_blk_s))

    def run(chunk_blk, n_k, table_buffers):
        total_chunks = n_k * chunk_blk
        tbl = jnp.pad(tbl_flat, (0, total_chunks * chunk_elems - d_pad))
        tbl = tbl.reshape(total_chunks, sub, LANES)
        bufs = table_buffers if table_buffers is not None else 2
        needed = bufs * chunk_blk * chunk_bytes + tiles_bytes + slack
        vmem_limit = min(budget, max(needed, 32 << 20))
        return _gather_call(lo_arr, hi_arr, ids2, tbl, tr=tr,
                            chunk_blk=chunk_blk, n_k=n_k,
                            table_buffers=table_buffers,
                            vmem_limit=vmem_limit)

    use_single = _BUFFERED_TABLE_OK[0] is not False
    if fits_double:
        configs = [(n_chunks, 1, 1 if use_single else None), (n_chunks, 1, None)]
    elif fits_single and use_single:
        configs = [(n_chunks, 1, 1), (chunk_blk_s, n_k_s, None)]
    else:
        configs = [(chunk_blk_s, n_k_s, None)]

    out2 = None
    for pos, (cb, nk, tb) in enumerate(configs):
        probe = (tb is not None and _BUFFERED_TABLE_OK[0] is None
                 and pos + 1 < len(configs))
        if probe:
            # One-time capability check for pipeline_mode=pl.Buffered(1); the
            # fallback is the SAME gather kernel (default buffering / streamed
            # table), so no silent semantic or perf-cliff change.
            try:
                out2 = run(cb, nk, tb)
                _BUFFERED_TABLE_OK[0] = True
                break
            except Exception:
                _BUFFERED_TABLE_OK[0] = False
                continue
        out2 = run(cb, nk, tb)
        break

    return out2.reshape(-1)[:n].reshape(orig_shape)


def make_neural_array_params(dim, random_init=False, key=None):
    """Deterministic parameter init mirroring NeuralArray.__init__."""
    if random_init:
        if key is None:
            key = jax.random.PRNGKey(0)
        return jax.random.normal(key, (dim,), dtype=jnp.float32)   # torch.randn
    return jnp.zeros((dim,), dtype=jnp.float32)                    # torch.zeros


if __name__ == "__main__":
    key = jax.random.PRNGKey(0)
    k_data, k_ids = jax.random.split(key)

    dim = 4096
    # random_init=True so the gathered output is non-trivial
    data = make_neural_array_params(dim, random_init=True, key=k_data)
    ids = jax.random.randint(k_ids, (2, 4, 16, 16), 0, dim, dtype=jnp.int32)

    out = neural_array_forward(data, ids)
    out = jax.block_until_ready(out)

    ref = data[ids]  # pure-JAX reference of the PyTorch forward
    assert out.shape == ids.shape
    assert out.dtype == data.dtype
    assert jnp.array_equal(out, ref), "Pallas gather does not match reference"

    # Also exercise negative-index wrap and a non-multiple-of-128 id count.
    ids_b = jax.random.randint(jax.random.PRNGKey(1), (3, 37), -dim, dim,
                               dtype=jnp.int32)
    out_b = jax.block_until_ready(neural_array_forward(data, ids_b))
    assert jnp.array_equal(out_b, data[ids_b]), "negative-index path mismatch"

    print("KERNEL_OK")
</pallas_src>

<mosaic_0001>
module attributes {stable_mosaic.version = 11 : i64} {
  func.func @kernel(%arg0: i32, %arg1: i32, %arg2: memref<2xi32, #tpu.memory_space<smem>>, %arg3: memref<2xi32, #tpu.memory_space<smem>>, %arg4: memref<8x128xi32, #tpu.memory_space<vmem>>, %arg5: memref<4x8x128xf32, #tpu.memory_space<vmem>>, %arg6: memref<8x128xf32, #tpu.memory_space<vmem>>) attributes {dimension_semantics = [#tpu.dimension_semantics<parallel>, #tpu.dimension_semantics<arbitrary>], iteration_bounds = array<i64: 2, 1>, scalar_prefetch = 2 : i64, scratch_operands = 0 : i64, tpu.core_type = #tpu.core_type<tc>, window_params = [{transform_indices = @transform_0, window_bounds = array<i64: 8, 128>}, {pipeline_mode = #tpu.pipeline_mode<synchronous>, transform_indices = @transform_1, window_bounds = array<i64: 4, 8, 128>}, {transform_indices = @transform_2, window_bounds = array<i64: 8, 128>}]} {
    %c0_i32 = arith.constant 0 : i32
    %0 = arith.cmpi eq, %arg1, %c0_i32 : i32
    %1 = arith.extui %0 : i1 to i32
    %c0_i32_0 = arith.constant 0 : i32
    %2 = arith.cmpi ne, %1, %c0_i32_0 : i32
    scf.if %2 {
      %cst = arith.constant 0.000000e+00 : f32
      %15 = vector.broadcast %cst : f32 to vector<8x128xf32>
      %c0 = arith.constant 0 : index
      %c0_3 = arith.constant 0 : index
      %16 = vector.load %arg6[%c0, %c0_3] : memref<8x128xf32, #tpu.memory_space<vmem>>, vector<8x128xf32>
      tpu.vector_store %arg6[%c0, %c0_3], %15 {strides = array<i32>} : memref<8x128xf32, #tpu.memory_space<vmem>>, vector<8x128xf32>,
    } else {
    }
    %c4_i32 = arith.constant 4 : i32
    %3 = arith.muli %arg1, %c4_i32 : i32
    %4 = arith.index_cast %arg0 : i32 to index
    %5 = memref.load %arg2[%4] : memref<2xi32, #tpu.memory_space<smem>>
    %6 = arith.maxsi %5, %3 : i32
    %7 = arith.index_cast %arg0 : i32 to index
    %8 = memref.load %arg3[%7] : memref<2xi32, #tpu.memory_space<smem>>
    %c1_i32 = arith.constant 1 : i32
    %9 = arith.addi %8, %c1_i32 : i32
    %c4_i32_1 = arith.constant 4 : i32
    %10 = arith.addi %3, %c4_i32_1 : i32
    %11 = arith.minsi %9, %10 : i32
    %12 = arith.cmpi sgt, %11, %6 : i32
    %13 = arith.extui %12 : i1 to i32
    %c0_i32_2 = arith.constant 0 : i32
    %14 = arith.cmpi ne, %13, %c0_i32_2 : i32
    scf.if %14 {
      %c0 = arith.constant 0 : index
      %c0_3 = arith.constant 0 : index
      %15 = vector.load %arg4[%c0, %c0_3] : memref<8x128xi32, #tpu.memory_space<vmem>>, vector<8x128xi32>
      %c127_i32 = arith.constant 127 : i32
      %16 = vector.broadcast %c127_i32 : i32 to vector<8x128xi32>
      %17 = arith.andi %15, %16 : vector<8x128xi32>
      %c7_i32 = arith.constant 7 : i32
      %18 = vector.broadcast %c7_i32 : i32 to vector<8x128xi32>
      %19 = arith.shrsi %15, %18 : vector<8x128xi32>
      %c0_4 = arith.constant 0 : index
      %c0_5 = arith.constant 0 : index
      %20 = vector.load %arg6[%c0_4, %c0_5] : memref<8x128xf32, #tpu.memory_space<vmem>>, vector<8x128xf32>
      %21 = arith.subi %11, %6 : i32
      %22 = arith.addi %6, %21 : i32
      %c1_i32_6 = arith.constant 1 : i32
      %23 = scf.for %arg7 = %6 to %22 step %c1_i32_6 iter_args(%arg8 = %20) -> (vector<8x128xf32>)  : i32 {
        %25 = arith.subi %arg7, %3 : i32
        %26 = arith.index_cast %25 : i32 to index
        %c0_9 = arith.constant 0 : index
        %c0_10 = arith.constant 0 : index
        %27 = vector.load %arg5[%26, %c0_9, %c0_10] : memref<4x8x128xf32, #tpu.memory_space<vmem>>, vector<1x8x128xf32>
        %28 = vector.shape_cast %27 : vector<1x8x128xf32> to vector<8x128xf32>
        %29 = vector.extract_strided_slice %28 {offsets = [0, 0], sizes = [1, 128], strides = [1, 1]} : vector<8x128xf32> to vector<1x128xf32>
        %30 = vector.shape_cast %29 : vector<1x128xf32> to vector<1x128xf32>
        %31 = vector.broadcast %30 : vector<1x128xf32> to vector<8x128xf32>
        %32 = vector.shape_cast %17 : vector<8x128xi32> to vector<8x128x1xi32>
        %33 = vector.shape_cast %32 : vector<8x128x1xi32> to vector<8x128xi32>
        %34 = tpu.dynamic_gather %31[%33] in [1] : vector<8x128xf32>, vector<8x128xi32> -> vector<8x128xf32>
        %c8_i32 = arith.constant 8 : i32
        %35 = arith.muli %arg7, %c8_i32 : i32
        %c0_i32_11 = arith.constant 0 : i32
        %36 = arith.addi %35, %c0_i32_11 : i32
        %37 = vector.broadcast %36 : i32 to vector<8x128xi32>
        %38 = arith.cmpi eq, %19, %37 : vector<8x128xi32>
        %39 = arith.select %38, %34, %arg8 : vector<8x128xi1>, vector<8x128xf32>
        %40 = vector.extract_strided_slice %28 {offsets = [1, 0], sizes = [1, 128], strides = [1, 1]} : vector<8x128xf32> to vector<1x128xf32>
        %41 = vector.shape_cast %40 : vector<1x128xf32> to vector<1x128xf32>
        %42 = vector.broadcast %41 : vector<1x128xf32> to vector<8x128xf32>
        %43 = vector.shape_cast %17 : vector<8x128xi32> to vector<8x128x1xi32>
        %44 = vector.shape_cast %43 : vector<8x128x1xi32> to vector<8x128xi32>
        %45 = tpu.dynamic_gather %42[%44] in [1] : vector<8x128xf32>, vector<8x128xi32> -> vector<8x128xf32>
        %c8_i32_12 = arith.constant 8 : i32
        %46 = arith.muli %arg7, %c8_i32_12 : i32
        %c1_i32_13 = arith.constant 1 : i32
        %47 = arith.addi %46, %c1_i32_13 : i32
        %48 = vector.broadcast %47 : i32 to vector<8x128xi32>
        %49 = arith.cmpi eq, %19, %48 : vector<8x128xi32>
        %50 = arith.select %49, %45, %39 : vector<8x128xi1>, vector<8x128xf32>
        %51 = vector.extract_strided_slice %28 {offsets = [2, 0], sizes = [1, 128], strides = [1, 1]} : vector<8x128xf32> to vector<1x128xf32>
        %52 = vector.shape_cast %51 : vector<1x128xf32> to vector<1x128xf32>
        %53 = vector.broadcast %52 : vector<1x128xf32> to vector<8x128xf32>
        %54 = vector.shape_cast %17 : vector<8x128xi32> to vector<8x128x1xi32>
        %55 = vector.shape_cast %54 : vector<8x128x1xi32> to vector<8x128xi32>
        %56 = tpu.dynamic_gather %53[%55] in [1] : vector<8x128xf32>, vector<8x128xi32> -> vector<8x128xf32>
        %c8_i32_14 = arith.constant 8 : i32
        %57 = arith.muli %arg7, %c8_i32_14 : i32
        %c2_i32 = arith.constant 2 : i32
        %58 = arith.addi %57, %c2_i32 : i32
        %59 = vector.broadcast %58 : i32 to vector<8x128xi32>
        %60 = arith.cmpi eq, %19, %59 : vector<8x128xi32>
        %61 = arith.select %60, %56, %50 : vector<8x128xi1>, vector<8x128xf32>
        %62 = vector.extract_strided_slice %28 {offsets = [3, 0], sizes = [1, 128], strides = [1, 1]} : vector<8x128xf32> to vector<1x128xf32>
        %63 = vector.shape_cast %62 : vector<1x128xf32> to vector<1x128xf32>
        %64 = vector.broadcast %63 : vector<1x128xf32> to vector<8x128xf32>
        %65 = vector.shape_cast %17 : vector<8x128xi32> to vector<8x128x1xi32>
        %66 = vector.shape_cast %65 : vector<8x128x1xi32> to vector<8x128xi32>
        %67 = tpu.dynamic_gather %64[%66] in [1] : vector<8x128xf32>, vector<8x128xi32> -> vector<8x128xf32>
        %c8_i32_15 = arith.constant 8 : i32
        %68 = arith.muli %arg7, %c8_i32_15 : i32
        %c3_i32 = arith.constant 3 : i32
        %69 = arith.addi %68, %c3_i32 : i32
        %70 = vector.broadcast %69 : i32 to vector<8x128xi32>
        %71 = arith.cmpi eq, %19, %70 : vector<8x128xi32>
        %72 = arith.select %71, %67, %61 : vector<8x128xi1>, vector<8x128xf32>
        %73 = vector.extract_strided_slice %28 {offsets = [4, 0], sizes = [1, 128], strides = [1, 1]} : vector<8x128xf32> to vector<1x128xf32>
        %74 = vector.shape_cast %73 : vector<1x128xf32> to vector<1x128xf32>
        %75 = vector.broadcast %74 : vector<1x128xf32> to vector<8x128xf32>
        %76 = vector.shape_cast %17 : vector<8x128xi32> to vector<8x128x1xi32>
        %77 = vector.shape_cast %76 : vector<8x128x1xi32> to vector<8x128xi32>
        %78 = tpu.dynamic_gather %75[%77] in [1] : vector<8x128xf32>, vector<8x128xi32> -> vector<8x128xf32>
        %c8_i32_16 = arith.constant 8 : i32
        %79 = arith.muli %arg7, %c8_i32_16 : i32
        %c4_i32_17 = arith.constant 4 : i32
        %80 = arith.addi %79, %c4_i32_17 : i32
        %81 = vector.broadcast %80 : i32 to vector<8x128xi32>
        %82 = arith.cmpi eq, %19, %81 : vector<8x128xi32>
        %83 = arith.select %82, %78, %72 : vector<8x128xi1>, vector<8x128xf32>
        %84 = vector.extract_strided_slice %28 {offsets = [5, 0], sizes = [1, 128], strides = [1, 1]} : vector<8x128xf32> to vector<1x128xf32>
        %85 = vector.shape_cast %84 : vector<1x128xf32> to vector<1x128xf32>
        %86 = vector.broadcast %85 : vector<1x128xf32> to vector<8x128xf32>
        %87 = vector.shape_cast %17 : vector<8x128xi32> to vector<8x128x1xi32>
        %88 = vector.shape_cast %87 : vector<8x128x1xi32> to vector<8x128xi32>
        %89 = tpu.dynamic_gather %86[%88] in [1] : vector<8x128xf32>, vector<8x128xi32> -> vector<8x128xf32>
        %c8_i32_18 = arith.constant 8 : i32
        %90 = arith.muli %arg7, %c8_i32_18 : i32
        %c5_i32 = arith.constant 5 : i32
        %91 = arith.addi %90, %c5_i32 : i32
        %92 = vector.broadcast %91 : i32 to vector<8x128xi32>
        %93 = arith.cmpi eq, %19, %92 : vector<8x128xi32>
        %94 = arith.select %93, %89, %83 : vector<8x128xi1>, vector<8x128xf32>
        %95 = vector.extract_strided_slice %28 {offsets = [6, 0], sizes = [1, 128], strides = [1, 1]} : vector<8x128xf32> to vector<1x128xf32>
        %96 = vector.shape_cast %95 : vector<1x128xf32> to vector<1x128xf32>
        %97 = vector.broadcast %96 : vector<1x128xf32> to vector<8x128xf32>
        %98 = vector.shape_cast %17 : vector<8x128xi32> to vector<8x128x1xi32>
        %99 = vector.shape_cast %98 : vector<8x128x1xi32> to vector<8x128xi32>
        %100 = tpu.dynamic_gather %97[%99] in [1] : vector<8x128xf32>, vector<8x128xi32> -> vector<8x128xf32>
        %c8_i32_19 = arith.constant 8 : i32
        %101 = arith.muli %arg7, %c8_i32_19 : i32
        %c6_i32 = arith.constant 6 : i32
        %102 = arith.addi %101, %c6_i32 : i32
        %103 = vector.broadcast %102 : i32 to vector<8x128xi32>
        %104 = arith.cmpi eq, %19, %103 : vector<8x128xi32>
        %105 = arith.select %104, %100, %94 : vector<8x128xi1>, vector<8x128xf32>
        %106 = vector.extract_strided_slice %28 {offsets = [7, 0], sizes = [1, 128], strides = [1, 1]} : vector<8x128xf32> to vector<1x128xf32>
        %107 = vector.shape_cast %106 : vector<1x128xf32> to vector<1x128xf32>
        %108 = vector.broadcast %107 : vector<1x128xf32> to vector<8x128xf32>
        %109 = vector.shape_cast %17 : vector<8x128xi32> to vector<8x128x1xi32>
        %110 = vector.shape_cast %109 : vector<8x128x1xi32> to vector<8x128xi32>
        %111 = tpu.dynamic_gather %108[%110] in [1] : vector<8x128xf32>, vector<8x128xi32> -> vector<8x128xf32>
        %c8_i32_20 = arith.constant 8 : i32
        %112 = arith.muli %arg7, %c8_i32_20 : i32
        %c7_i32_21 = arith.constant 7 : i32
        %113 = arith.addi %112, %c7_i32_21 : i32
        %114 = vector.broadcast %113 : i32 to vector<8x128xi32>
        %115 = arith.cmpi eq, %19, %114 : vector<8x128xi32>
        %116 = arith.select %115, %111, %105 : vector<8x128xi1>, vector<8x128xf32>
        scf.yield %116 : vector<8x128xf32>
      }
      %c0_7 = arith.constant 0 : index
      %c0_8 = arith.constant 0 : index
      %24 = vector.load %arg6[%c0_7, %c0_8] : memref<8x128xf32, #tpu.memory_space<vmem>>, vector<8x128xf32>
      tpu.vector_store %arg6[%c0_7, %c0_8], %23 {strides = array<i32>} : memref<8x128xf32, #tpu.memory_space<vmem>>, vector<8x128xf32>,
    } else {
    }
    return
  }
  func.func @transform_0(%arg0: i32, %arg1: i32, %arg2: memref<2xi32, #tpu.memory_space<smem>>, %arg3: memref<2xi32, #tpu.memory_space<smem>>) -> (i32, i32) {
    %c0_i32 = arith.constant 0 : i32
    %c0_i32_0 = arith.constant 0 : i32
    return %arg0, %c0_i32 : i32, i32
  }
  func.func @transform_1(%arg0: i32, %arg1: i32, %arg2: memref<2xi32, #tpu.memory_space<smem>>, %arg3: memref<2xi32, #tpu.memory_space<smem>>) -> (i32, i32, i32) {
    %c0_i32 = arith.constant 0 : i32
    %c0_i32_0 = arith.constant 0 : i32
    %c0_i32_1 = arith.constant 0 : i32
    return %arg1, %c0_i32, %c0_i32_0 : i32, i32, i32
  }
  func.func @transform_2(%arg0: i32, %arg1: i32, %arg2: memref<2xi32, #tpu.memory_space<smem>>, %arg3: memref<2xi32, #tpu.memory_space<smem>>) -> (i32, i32) {
    %c0_i32 = arith.constant 0 : i32
    %c0_i32_0 = arith.constant 0 : i32
    return %arg0, %c0_i32 : i32, i32
  }
}

module attributes {stable_mosaic.version = 11 : i64} {
  func.func @kernel(%arg0: i32, %arg1: i32, %arg2: memref<2xi32, #tpu.memory_space<smem>>, %arg3: memref<2xi32, #tpu.memory_space<smem>>, %arg4: memref<8x128xi32, #tpu.memory_space<vmem>>, %arg5: memref<4x8x128xf32, #tpu.memory_space<vmem>>, %arg6: memref<8x128xf32, #tpu.memory_space<vmem>>) attributes {dimension_semantics = [#tpu.dimension_semantics<parallel>, #tpu.dimension_semantics<arbitrary>], iteration_bounds = array<i64: 2, 1>, scalar_prefetch = 2 : i64, scratch_operands = 0 : i64, tpu.core_type = #tpu.core_type<tc>, window_params = [{transform_indices = @transform_0, window_bounds = array<i64: 8, 128>}, {transform_indices = @transform_1, window_bounds = array<i64: 4, 8, 128>}, {transform_indices = @transform_2, window_bounds = array<i64: 8, 128>}]} {
    %c0_i32 = arith.constant 0 : i32
    %0 = arith.cmpi eq, %arg1, %c0_i32 : i32
    %1 = arith.extui %0 : i1 to i32
    %c0_i32_0 = arith.constant 0 : i32
    %2 = arith.cmpi ne, %1, %c0_i32_0 : i32
    scf.if %2 {
      %cst = arith.constant 0.000000e+00 : f32
      %15 = vector.broadcast %cst : f32 to vector<8x128xf32>
      %c0 = arith.constant 0 : index
      %c0_3 = arith.constant 0 : index
      %16 = vector.load %arg6[%c0, %c0_3] : memref<8x128xf32, #tpu.memory_space<vmem>>, vector<8x128xf32>
      tpu.vector_store %arg6[%c0, %c0_3], %15 {strides = array<i32>} : memref<8x128xf32, #tpu.memory_space<vmem>>, vector<8x128xf32>,
    } else {
    }
    %c4_i32 = arith.constant 4 : i32
    %3 = arith.muli %arg1, %c4_i32 : i32
    %4 = arith.index_cast %arg0 : i32 to index
    %5 = memref.load %arg2[%4] : memref<2xi32, #tpu.memory_space<smem>>
    %6 = arith.maxsi %5, %3 : i32
    %7 = arith.index_cast %arg0 : i32 to index
    %8 = memref.load %arg3[%7] : memref<2xi32, #tpu.memory_space<smem>>
    %c1_i32 = arith.constant 1 : i32
    %9 = arith.addi %8, %c1_i32 : i32
    %c4_i32_1 = arith.constant 4 : i32
    %10 = arith.addi %3, %c4_i32_1 : i32
    %11 = arith.minsi %9, %10 : i32
    %12 = arith.cmpi sgt, %11, %6 : i32
    %13 = arith.extui %12 : i1 to i32
    %c0_i32_2 = arith.constant 0 : i32
    %14 = arith.cmpi ne, %13, %c0_i32_2 : i32
    scf.if %14 {
      %c0 = arith.constant 0 : index
      %c0_3 = arith.constant 0 : index
      %15 = vector.load %arg4[%c0, %c0_3] : memref<8x128xi32, #tpu.memory_space<vmem>>, vector<8x128xi32>
      %c127_i32 = arith.constant 127 : i32
      %16 = vector.broadcast %c127_i32 : i32 to vector<8x128xi32>
      %17 = arith.andi %15, %16 : vector<8x128xi32>
      %c7_i32 = arith.constant 7 : i32
      %18 = vector.broadcast %c7_i32 : i32 to vector<8x128xi32>
      %19 = arith.shrsi %15, %18 : vector<8x128xi32>
      %c0_4 = arith.constant 0 : index
      %c0_5 = arith.constant 0 : index
      %20 = vector.load %arg6[%c0_4, %c0_5] : memref<8x128xf32, #tpu.memory_space<vmem>>, vector<8x128xf32>
      %21 = arith.subi %11, %6 : i32
      %22 = arith.addi %6, %21 : i32
      %c1_i32_6 = arith.constant 1 : i32
      %23 = scf.for %arg7 = %6 to %22 step %c1_i32_6 iter_args(%arg8 = %20) -> (vector<8x128xf32>)  : i32 {
        %25 = arith.subi %arg7, %3 : i32
        %26 = arith.index_cast %25 : i32 to index
        %c0_9 = arith.constant 0 : index
        %c0_10 = arith.constant 0 : index
        %27 = vector.load %arg5[%26, %c0_9, %c0_10] : memref<4x8x128xf32, #tpu.memory_space<vmem>>, vector<1x8x128xf32>
        %28 = vector.shape_cast %27 : vector<1x8x128xf32> to vector<8x128xf32>
        %29 = vector.extract_strided_slice %28 {offsets = [0, 0], sizes = [1, 128], strides = [1, 1]} : vector<8x128xf32> to vector<1x128xf32>
        %30 = vector.shape_cast %29 : vector<1x128xf32> to vector<1x128xf32>
        %31 = vector.broadcast %30 : vector<1x128xf32> to vector<8x128xf32>
        %32 = vector.shape_cast %17 : vector<8x128xi32> to vector<8x128x1xi32>
        %33 = vector.shape_cast %32 : vector<8x128x1xi32> to vector<8x128xi32>
        %34 = tpu.dynamic_gather %31[%33] in [1] : vector<8x128xf32>, vector<8x128xi32> -> vector<8x128xf32>
        %c8_i32 = arith.constant 8 : i32
        %35 = arith.muli %arg7, %c8_i32 : i32
        %c0_i32_11 = arith.constant 0 : i32
        %36 = arith.addi %35, %c0_i32_11 : i32
        %37 = vector.broadcast %36 : i32 to vector<8x128xi32>
        %38 = arith.cmpi eq, %19, %37 : vector<8x128xi32>
        %39 = arith.select %38, %34, %arg8 : vector<8x128xi1>, vector<8x128xf32>
        %40 = vector.extract_strided_slice %28 {offsets = [1, 0], sizes = [1, 128], strides = [1, 1]} : vector<8x128xf32> to vector<1x128xf32>
        %41 = vector.shape_cast %40 : vector<1x128xf32> to vector<1x128xf32>
        %42 = vector.broadcast %41 : vector<1x128xf32> to vector<8x128xf32>
        %43 = vector.shape_cast %17 : vector<8x128xi32> to vector<8x128x1xi32>
        %44 = vector.shape_cast %43 : vector<8x128x1xi32> to vector<8x128xi32>
        %45 = tpu.dynamic_gather %42[%44] in [1] : vector<8x128xf32>, vector<8x128xi32> -> vector<8x128xf32>
        %c8_i32_12 = arith.constant 8 : i32
        %46 = arith.muli %arg7, %c8_i32_12 : i32
        %c1_i32_13 = arith.constant 1 : i32
        %47 = arith.addi %46, %c1_i32_13 : i32
        %48 = vector.broadcast %47 : i32 to vector<8x128xi32>
        %49 = arith.cmpi eq, %19, %48 : vector<8x128xi32>
        %50 = arith.select %49, %45, %39 : vector<8x128xi1>, vector<8x128xf32>
        %51 = vector.extract_strided_slice %28 {offsets = [2, 0], sizes = [1, 128], strides = [1, 1]} : vector<8x128xf32> to vector<1x128xf32>
        %52 = vector.shape_cast %51 : vector<1x128xf32> to vector<1x128xf32>
        %53 = vector.broadcast %52 : vector<1x128xf32> to vector<8x128xf32>
        %54 = vector.shape_cast %17 : vector<8x128xi32> to vector<8x128x1xi32>
        %55 = vector.shape_cast %54 : vector<8x128x1xi32> to vector<8x128xi32>
        %56 = tpu.dynamic_gather %53[%55] in [1] : vector<8x128xf32>, vector<8x128xi32> -> vector<8x128xf32>
        %c8_i32_14 = arith.constant 8 : i32
        %57 = arith.muli %arg7, %c8_i32_14 : i32
        %c2_i32 = arith.constant 2 : i32
        %58 = arith.addi %57, %c2_i32 : i32
        %59 = vector.broadcast %58 : i32 to vector<8x128xi32>
        %60 = arith.cmpi eq, %19, %59 : vector<8x128xi32>
        %61 = arith.select %60, %56, %50 : vector<8x128xi1>, vector<8x128xf32>
        %62 = vector.extract_strided_slice %28 {offsets = [3, 0], sizes = [1, 128], strides = [1, 1]} : vector<8x128xf32> to vector<1x128xf32>
        %63 = vector.shape_cast %62 : vector<1x128xf32> to vector<1x128xf32>
        %64 = vector.broadcast %63 : vector<1x128xf32> to vector<8x128xf32>
        %65 = vector.shape_cast %17 : vector<8x128xi32> to vector<8x128x1xi32>
        %66 = vector.shape_cast %65 : vector<8x128x1xi32> to vector<8x128xi32>
        %67 = tpu.dynamic_gather %64[%66] in [1] : vector<8x128xf32>, vector<8x128xi32> -> vector<8x128xf32>
        %c8_i32_15 = arith.constant 8 : i32
        %68 = arith.muli %arg7, %c8_i32_15 : i32
        %c3_i32 = arith.constant 3 : i32
        %69 = arith.addi %68, %c3_i32 : i32
        %70 = vector.broadcast %69 : i32 to vector<8x128xi32>
        %71 = arith.cmpi eq, %19, %70 : vector<8x128xi32>
        %72 = arith.select %71, %67, %61 : vector<8x128xi1>, vector<8x128xf32>
        %73 = vector.extract_strided_slice %28 {offsets = [4, 0], sizes = [1, 128], strides = [1, 1]} : vector<8x128xf32> to vector<1x128xf32>
        %74 = vector.shape_cast %73 : vector<1x128xf32> to vector<1x128xf32>
        %75 = vector.broadcast %74 : vector<1x128xf32> to vector<8x128xf32>
        %76 = vector.shape_cast %17 : vector<8x128xi32> to vector<8x128x1xi32>
        %77 = vector.shape_cast %76 : vector<8x128x1xi32> to vector<8x128xi32>
        %78 = tpu.dynamic_gather %75[%77] in [1] : vector<8x128xf32>, vector<8x128xi32> -> vector<8x128xf32>
        %c8_i32_16 = arith.constant 8 : i32
        %79 = arith.muli %arg7, %c8_i32_16 : i32
        %c4_i32_17 = arith.constant 4 : i32
        %80 = arith.addi %79, %c4_i32_17 : i32
        %81 = vector.broadcast %80 : i32 to vector<8x128xi32>
        %82 = arith.cmpi eq, %19, %81 : vector<8x128xi32>
        %83 = arith.select %82, %78, %72 : vector<8x128xi1>, vector<8x128xf32>
        %84 = vector.extract_strided_slice %28 {offsets = [5, 0], sizes = [1, 128], strides = [1, 1]} : vector<8x128xf32> to vector<1x128xf32>
        %85 = vector.shape_cast %84 : vector<1x128xf32> to vector<1x128xf32>
        %86 = vector.broadcast %85 : vector<1x128xf32> to vector<8x128xf32>
        %87 = vector.shape_cast %17 : vector<8x128xi32> to vector<8x128x1xi32>
        %88 = vector.shape_cast %87 : vector<8x128x1xi32> to vector<8x128xi32>
        %89 = tpu.dynamic_gather %86[%88] in [1] : vector<8x128xf32>, vector<8x128xi32> -> vector<8x128xf32>
        %c8_i32_18 = arith.constant 8 : i32
        %90 = arith.muli %arg7, %c8_i32_18 : i32
        %c5_i32 = arith.constant 5 : i32
        %91 = arith.addi %90, %c5_i32 : i32
        %92 = vector.broadcast %91 : i32 to vector<8x128xi32>
        %93 = arith.cmpi eq, %19, %92 : vector<8x128xi32>
        %94 = arith.select %93, %89, %83 : vector<8x128xi1>, vector<8x128xf32>
        %95 = vector.extract_strided_slice %28 {offsets = [6, 0], sizes = [1, 128], strides = [1, 1]} : vector<8x128xf32> to vector<1x128xf32>
        %96 = vector.shape_cast %95 : vector<1x128xf32> to vector<1x128xf32>
        %97 = vector.broadcast %96 : vector<1x128xf32> to vector<8x128xf32>
        %98 = vector.shape_cast %17 : vector<8x128xi32> to vector<8x128x1xi32>
        %99 = vector.shape_cast %98 : vector<8x128x1xi32> to vector<8x128xi32>
        %100 = tpu.dynamic_gather %97[%99] in [1] : vector<8x128xf32>, vector<8x128xi32> -> vector<8x128xf32>
        %c8_i32_19 = arith.constant 8 : i32
        %101 = arith.muli %arg7, %c8_i32_19 : i32
        %c6_i32 = arith.constant 6 : i32
        %102 = arith.addi %101, %c6_i32 : i32
        %103 = vector.broadcast %102 : i32 to vector<8x128xi32>
        %104 = arith.cmpi eq, %19, %103 : vector<8x128xi32>
        %105 = arith.select %104, %100, %94 : vector<8x128xi1>, vector<8x128xf32>
        %106 = vector.extract_strided_slice %28 {offsets = [7, 0], sizes = [1, 128], strides = [1, 1]} : vector<8x128xf32> to vector<1x128xf32>
        %107 = vector.shape_cast %106 : vector<1x128xf32> to vector<1x128xf32>
        %108 = vector.broadcast %107 : vector<1x128xf32> to vector<8x128xf32>
        %109 = vector.shape_cast %17 : vector<8x128xi32> to vector<8x128x1xi32>
        %110 = vector.shape_cast %109 : vector<8x128x1xi32> to vector<8x128xi32>
        %111 = tpu.dynamic_gather %108[%110] in [1] : vector<8x128xf32>, vector<8x128xi32> -> vector<8x128xf32>
        %c8_i32_20 = arith.constant 8 : i32
        %112 = arith.muli %arg7, %c8_i32_20 : i32
        %c7_i32_21 = arith.constant 7 : i32
        %113 = arith.addi %112, %c7_i32_21 : i32
        %114 = vector.broadcast %113 : i32 to vector<8x128xi32>
        %115 = arith.cmpi eq, %19, %114 : vector<8x128xi32>
        %116 = arith.select %115, %111, %105 : vector<8x128xi1>, vector<8x128xf32>
        scf.yield %116 : vector<8x128xf32>
      }
      %c0_7 = arith.constant 0 : index
      %c0_8 = arith.constant 0 : index
      %24 = vector.load %arg6[%c0_7, %c0_8] : memref<8x128xf32, #tpu.memory_space<vmem>>, vector<8x128xf32>
      tpu.vector_store %arg6[%c0_7, %c0_8], %23 {strides = array<i32>} : memref<8x128xf32, #tpu.memory_space<vmem>>, vector<8x128xf32>,
    } else {
    }
    return
  }
  func.func @transform_0(%arg0: i32, %arg1: i32, %arg2: memref<2xi32, #tpu.memory_space<smem>>, %arg3: memref<2xi32, #tpu.memory_space<smem>>) -> (i32, i32) {
    %c0_i32 = arith.constant 0 : i32
    %c0_i32_0 = arith.constant 0 : i32
    return %arg0, %c0_i32 : i32, i32
  }
  func.func @transform_1(%arg0: i32, %arg1: i32, %arg2: memref<2xi32, #tpu.memory_space<smem>>, %arg3: memref<2xi32, #tpu.memory_space<smem>>) -> (i32, i32, i32) {
    %c0_i32 = arith.constant 0 : i32
    %c0_i32_0 = arith.constant 0 : i32
    %c0_i32_1 = arith.constant 0 : i32
    return %arg1, %c0_i32, %c0_i32_0 : i32, i32, i32
  }
  func.func @transform_2(%arg0: i32, %arg1: i32, %arg2: memref<2xi32, #tpu.memory_space<smem>>, %arg3: memref<2xi32, #tpu.memory_space<smem>>) -> (i32, i32) {
    %c0_i32 = arith.constant 0 : i32
    %c0_i32_0 = arith.constant 0 : i32
    return %arg0, %c0_i32 : i32, i32
  }
}

</mosaic_0001>

<bundles_post_ra>
// kernel: tpu_custom_call.1
= control target key start
LH: loop header
LB: loop body
LE: loop exit
PB: predicated region body
PF: predicated region fallthrough
CT: control target
= control target key end

     0   :  { %s749_s15 = smov [#allocation3]   ;;  %s1016_s0 = inlined_call_operand.hbm [shape: s32[2], index: 0, kind: input, shape index: {}]   ;;  %s1017_s2 = inlined_call_operand.hbm [shape: s32[16,128], index: 2, kind: input, shape index: {}]   ;;  %s1018_s3 = inlined_call_operand.hbm [shape: f32[4,8,128], index: 3, kind: input, shape index: {}]   ;;  %s1019_s4 = inlined_call_operand.hbm [shape: f32[16,128], index: 4, kind: output, shape index: {}]   ;;  %s1020_s1 = inlined_call_operand.vmem [shape: s32[2], index: 1, kind: input, shape index: {}]  }
   0x1   :  { %10 = dma.hbm_to_smem %s1016_s0, 16, %s749_s15, [#allocation2] }
   0x2   :  { %s11_s20 = sshll.u32 %s1020_s1, 4  ;;  %s12_s20 = int_to_ptr.vmem [resolvable:$true] %s11_s20 }
   0x3   :  { %s571_s21 = scalar_lea.vmem %s12_s20, 16  ;;  %p576_p1 = scmp.lt.s32.totalorder %s12_s20, %s12_s20 }
   0x4   :  { %p572_p0 = scmp.ne.s32.totalorder %s12_s20, %s571_s21  ;;  %p577_p2 = scmp.lt.s32.totalorder %s571_s21, %s571_s21 }
   0x6   :  { %p578_p3 = por %p577_p2, %p576_p1 }
   0x8   :  { %p579_p4 = pnand %p578_p3, %p572_p0 }
   0xa   :  { %582 = shalt.err (!%p579_p4)  }
   0xb   :  { %s750_s22 = smov [#allocation4]  }
   0xc   :  { %14 = dma.vmem_to_smem %s12_s20, 16, %s750_s22, [#allocation2] }
   0xd   :  { %699 = dma.done.wait [#allocation2], 32 }
   0xe   :  { %700 = vsyncadd [#allocation2], 4294967264 }
   0xf   :  { %16 = sfence }
  0x10   :  { %17 = vsyncpa [#allocation6], 0 }
  0x11   :  { %19 = vsyncpa [#allocation6 + $0x1], 0 }
  0x12   :  { %20 = vsyncpa [#allocation9], 0 }
  0x13   :  { %21 = vsyncpa [#allocation7], 0 }
  0x14   :  { %23 = vsyncpa [#allocation7 + $0x1], 0  ;;  %s788_s0 = smov 0   ;;  %s790_s1 = smov 0  }
  0x15   :  { %s792_s23 = smov 0   ;;  %s794_s24 = smov 0  }
  0x16   :  { %s796_s25 = smov 0   ;;  %s798_s26 = smov 0  }
  0x17 LB: > { %s441_s27 = sadd.s32 4294967295, %s735_s26   ;;  %s442_s28 = sadd.s32 4294967294, %s735_s26   ;;  %s735_s26 = sphi %s798_s26, %s29_s26   ;;  %s731_s25 = sphi %s796_s25, %s1041_s25   ;;  %s727_s24 = sphi %s794_s24, %s1040_s24   ;;  %s723_s23 = sphi %s792_s23, %s1039_s23   ;;  %s719_s1 = sphi %s790_s1, %s1038_s1   ;;  %s715_s0 = sphi %s788_s0, %s1037_s0  }
  0x18   : > { %p61_p5 = scmp.ne.s32.totalorder %s719_s1, %s715_s0  ;;  %p822_p6 = scmp.eq.s32.totalorder %s441_s27, 0 }
  0x19   : > { %p826_p7 = scmp.eq.s32.totalorder %s441_s27, 1  ;;  %p117_p8 = scmp.eq.s32.totalorder %s442_s28, 1 }
  0x1a   : > { %p832_p9 = por %p822_p6, %p61_p5  ;;  %p443_p10 = scmp.ge.s32.totalorder %s735_s26, 1 }
  0x1b   : > { %p837_p11 = por %p117_p8, %p61_p5  ;;  %p124_p12 = scmp.lt.s32.totalorder %s735_s26, 3 }
  0x1c   : > { %s1024_s5 = scalar_select %p832_p9, 1, 0 }
  0x1d   : > { %s1025_s6 = scalar_select %p837_p11, 1, 0 }
  0x1e   : > { %p842_p13 = pnand %p443_p10, %p124_p12  ;;  %s751_s8 = smov [#allocation8]  }
  0x1f   : > { %s139_s9 = sshll.u32 %s751_s8, 4  ;;  %s41_s11 = sadd.s32 1, %s731_s25  ;;  %s140_s9 = int_to_ptr.vmem [resolvable:$true] %s139_s9 }
  0x20   : > { %p467_p0 = pneg %p842_p13  ;;  %s594_s12 = scalar_lea.vmem %s140_s9, 512 }
  0x21   : > { %p595_p4 = scmp.ne.s32.totalorder %s140_s9, %s594_s12  ;;  %p602_p10 = scmp.lt.s32.totalorder %s140_s9, %s140_s9 }
  0x22   : > { %p851_p2 = pnand %p467_p0, %p822_p6  ;;  %p603_p12 = scmp.lt.s32.totalorder %s594_s12, %s594_s12 }
  0x24   : > { %p585_p3 = pneg %p851_p2  ;;  %p604_p11 = por %p603_p12, %p602_p10 }
  0x26   : > { %p597_p5 = pnand %p595_p4, %p585_p3 }
  0x28   : > { %p598_p8 = pneg %p597_p5 }
  0x2a   : > { %p605_p9 = pnand %p604_p11, %p598_p8 }
  0x2c   : > { %608 = shalt.err (!%p605_p9)
}
  0x2d   : > { %s752_s13 = smov 128   ;;  %s753_s14 = smov 8  }
  0x2e   : > { %470 = dma.hbm_to_vmem [thread:$0]  (!%p851_p2), %s1018_s3, 512, %s140_s9, [#allocation9], %s752_s13, %s752_s13, %s753_s14  }
  0x2f   : > { %p43_p11 = scmp.ge.s32.totalorder %s41_s11, 2  ;;  %s48_s17 = sadd.s32 1, %s723_s23 }
  0x30   : > { %p55_p9 = scmp.ne.s32.totalorder %s723_s23, %s719_s1  ;;  %p56_p0 = scmp.eq.s32.totalorder %s735_s26, 0 }
  0x31   : > { %s1043_s11 = smov (%p43_p11, %s41_s11), 0  ;;  %p480_p5 = scmp.lt.s32.totalorder %s735_s26, 2 }
  0x32   : > { %p869_p3 = por %p56_p0, %p55_p9  ;;  %p875_p4 = por %p826_p7, %p55_p9 }
  0x33   : > { %s45_s20 = ssub.s32 %s731_s25, %s1043_s11  ;;  %s153_s21 = sand.u32 1, %s723_s23  }
  0x34   : > { %p46_p2 = scmp.eq.s32.totalorder %s45_s20, 0  ;;  %s446_s22 = sshll.u32 %s153_s21, 3 }
  0x35   : > { %s447_s28 = sshll.u32 %s731_s25, 7  ;;  %s157_s12 = scalar_lea.vmem [#allocation5], %s446_s22 }
  0x36   : > { %s884_s27 = scalar_select %p46_p2, %s723_s23, %s48_s17  }
  0x37   : > { %s162_s10 = scalar_lea.hbm %s1017_s2, %s447_s28  ;;  %s164_s13 = sshll.u32 %s157_s12, 4  ;;  %s165_s13 = int_to_ptr.vmem [resolvable:$true] %s164_s13 }
  0x38   : > { %p892_p7 = pnand %p480_p5, %p869_p3  ;;  %s154_s14 = scalar_lea.sflag [#allocation6], %s153_s21 }
  0x39   : > { %s622_s15 = scalar_lea.vmem %s165_s13, 128  ;;  %s754_s16 = smov [#allocation5]  }
  0x3a   : > { %p611_p8 = pneg %p892_p7  ;;  %p623_p10 = scmp.ne.s32.totalorder %s165_s13, %s622_s15 }
  0x3b   : > { %s627_s17 = sshll.u32 %s754_s16, 4  ;;  %s628_s17 = int_to_ptr.vmem [resolvable:$false] %s627_s17 }
  0x3c   : > { %p625_p12 = pnand %p623_p10, %p611_p8  ;;  %s629_s20 = scalar_lea.vmem %s628_s17, 256 }
  0x3d   : > { %p630_p9 = scmp.lt.s32.totalorder %s165_s13, %s628_s17  ;;  %p631_p0 = scmp.lt.s32.totalorder %s629_s20, %s622_s15 }
  0x3e   : > { %p626_p11 = pneg %p625_p12 }
  0x3f   : > { %p632_p2 = por %p631_p0, %p630_p9 }
  0x41   : > { %p633_p1 = pnand %p632_p2, %p626_p11 }
  0x43   : > { %636 = shalt.err (!%p633_p1)
}
  0x44   : > { %474 = dma.hbm_to_vmem [thread:$0]  (!%p892_p7), %s162_s10, 128, %s165_s13, %s154_s14  }
  0x45   : > { %173 = sbr.rel (%p842_p13) target bundleno = 271 (0x10f), region = 28  ;;  %s903_s18 = sand.u32 (!%p842_p13), 1, %s719_s1  }
  0x46   : > { %s449_s21 = sshll.u32 (!%p842_p13), %s903_s18, 3  ;;  %s176_s22 = scalar_lea.sflag (!%p842_p13), [#allocation6], %s903_s18 }
  0x47   : > { %s179_s28 = scalar_lea.vmem (!%p842_p13), [#allocation5], %s449_s21  ;;  %p1031_p3 = scmp.ne.s32.totalorder (!%p842_p13), %s1024_s5, 0 }
  0x4a   : > { %702 = dma.done.wait (%p1031_p3), %s176_s22, 128  }
  0x4b   : > { %704 = vsyncadd (%p1031_p3), %s176_s22, 4294967168 }
  0x4c   : > { %706 = dma.done.wait (%p822_p6), [#allocation9], 512  }
  0x4d   : > { %708 = vsyncadd (%p822_p6), [#allocation9], 4294966784  ;;  %s211_s7 = sld [smem:[#allocation3 + %s727_s24]]  ;;  %s916_s8 = scalar_lea.vmem [#allocation10], %s449_s21  ;;  %v755_v0 = vmov 0.0  }
  0x4e   : > { %209 = vst [vmem:[%s916_s8] sm:$0xff] %v755_v0  ;;  %s214_s9 = sld [smem:[#allocation4 + %s727_s24]] }
  0x53   : > { %p212_p13 = scmp.gt.s32.totalorder %s211_s7, 0 }
  0x54   : > { %s215_s10 = sadd.s32 1, %s214_s9 }
  0x55   : > { %s1045_s7 = smov (!%p212_p13, %s211_s7), 0  ;;  %p217_p1 = scmp.lt.s32.totalorder %s215_s10, 4 }
  0x57   : > { %s1047_s10 = smov (!%p217_p1, %s215_s10), 4 }
  0x58   : > { %p452_p5 = scmp.le.s32.totalorder %s1047_s10, %s1045_s7 }
  0x59   : > { %p393_p6 = scmp.ge.s32.totalorder (!%p452_p5), %s1045_s7, %s1047_s10 }
  0x5a   : > { %222 = sbr.rel (%p452_p5) target bundleno = 248 (0xf8), region = 44 }
  0x5f   : > { %v923_v1 = vld [vmem:[%s179_s28] sm:$0xff]  ;;  %v226_v2 = vld [vmem:[%s916_s8] sm:$0xff]   ;;  %395 = sbr.rel (%p393_p6) target bundleno = 247 (0xf7), region = 88 }
  0x60   : > { %v224_v3 = vand.u32 127, %v923_v1  ;;  %v928_v4 = vshra.s32 %v923_v1, 7  ;;  %v1032_v5 = vmov %v226_v2 }
  0x64 LB: >> { %562 = vset.pattern.permute.xlu1 %v224_v3  ;;  %561 = vset.pattern.permute.xlu0 %v224_v3  ;;  %v238_v6 = vlaneseq  ;;  %s946_s29 = sshll.u32 %s743_s7, 3  ;;  %s230_s7 = sadd.s32 1, %s743_s7   ;;  %s743_s7 = sphi %s1045_s7, %s230_s7   ;;  %v739_v2 = vphi %v226_v2, %v1033_v2  }
  0x65   : >> { %s236_s5 = scalar_lea.vmem [#allocation8], %s946_s29  ;;  %s256_s12 = sadd.s32 1, %s946_s29  ;;  %v246_v25 = vstv %s946_s29 }
  0x66   : >> { %v239_v7 = vshrl.u32 %v238_v6, 7  ;;  %v237_v8 = vld [vmem:[%s236_s5] sm:$0xff]  ;;  %s267_s13 = sadd.s32 2, %s946_s29  ;;  %s278_s30 = sadd.s32 3, %s946_s29  ;;  %v257_v26 = vstv %s256_s12  ;;  %vm247_vm0 = vcmp.eq.s32.totalorder %v928_v4, %v246_v25 }
  0x67   : >> { %v268_v29 = vstv %s267_s13  ;;  %s289_s14 = sadd.s32 4, %s946_s29  ;;  %v279_v30 = vstv %s278_s30  ;;  %vm258_vm1 = vcmp.eq.s32.totalorder %v928_v4, %v257_v26  ;;  %s300_s15 = sadd.s32 5, %s946_s29 }
  0x68   : >> { %v262_v9 = vsub.s32 2, %v239_v7  ;;  %v240_v10 = vsub.s32 0, %v239_v7  ;;  %v273_v11 = vsub.s32 3, %v239_v7  ;;  %v251_v12 = vsub.s32 1, %v239_v7  ;;  %s311_s16 = sadd.s32 6, %s946_s29  ;;  %s322_s17 = sadd.s32 7, %s946_s29 }
  0x69   : >> { %v295_v17 = vsub.s32 5, %v239_v7  ;;  %v284_v18 = vsub.s32 4, %v239_v7  ;;  %v317_v21 = vsub.s32 7, %v239_v7  ;;  %v306_v22 = vsub.s32 6, %v239_v7  ;;  %p229_p7 = scmp.ge.s32.totalorder %s230_s7, %s1047_s10 }
  0x6a   : >> { %v263_v13 = vrot.slane %v237_v8, %v262_v9  ;;  %v241_v14 = vrot.slane %v237_v8, %v240_v10  ;;  %v274_v15 = vrot.slane %v237_v8, %v273_v11  ;;  %v252_v16 = vrot.slane %v237_v8, %v251_v12 }
  0x6b   : >> { %v296_v19 = vrot.slane %v237_v8, %v295_v17  ;;  %v285_v20 = vrot.slane %v237_v8, %v284_v18  ;;  %v318_v23 = vrot.slane %v237_v8, %v317_v21  ;;  %v307_v24 = vrot.slane %v237_v8, %v306_v22 }
  0x6c   : >> { %265 = vperm.xlu1 %562, %v263_v13   ;;  %243 = vperm.xlu0 %561, %v241_v14   ;;  %vm269_vm2 = vcmp.eq.s32.totalorder %v928_v4, %v268_v29  ;;  %v290_v31 = vstv %s289_s14  ;;  %vm280_vm3 = vcmp.eq.s32.totalorder %v928_v4, %v279_v30  ;;  %v301_v37 = vstv %s300_s15 }
  0x6d   : >> { %vm291_vm4 = vcmp.eq.s32.totalorder %v928_v4, %v290_v31  ;;  %v312_v39 = vstv %s311_s16  ;;  %v323_v42 = vstv %s322_s17  ;;  %vm302_vm5 = vcmp.eq.s32.totalorder %v928_v4, %v301_v37 }
  0x6e   : >> { %vm313_vm6 = vcmp.eq.s32.totalorder %v928_v4, %v312_v39  ;;  %vm324_vm7 = vcmp.eq.s32.totalorder %v928_v4, %v323_v42 }
  0x70   : >> { %276 = vperm.xlu1 %562, %v274_v15   ;;  %254 = vperm.xlu0 %561, %v252_v16  }
  0x74   : >> { %298 = vperm.xlu1 %562, %v296_v19   ;;  %287 = vperm.xlu0 %561, %v285_v20  }
  0x78   : >> { %320 = vperm.xlu1 %562, %v318_v23   ;;  %309 = vperm.xlu0 %561, %v307_v24  }
  0xe7   : >> { %v266_v27 = vpop.permute.xlu1 %265  ;;  %v244_v28 = vpop.permute.xlu0 %243 }
  0xe8   : >> { %v248_v32 = vsel %vm247_vm0, %v244_v28, %v739_v2 }
  0xeb   : >> { %v277_v33 = vpop.permute.xlu1 %276  ;;  %v255_v34 = vpop.permute.xlu0 %254 }
  0xec   : >> { %v259_v35 = vsel %vm258_vm1, %v255_v34, %v248_v32 }
  0xed   : >> { %v270_v36 = vsel %vm269_vm2, %v266_v27, %v259_v35 }
  0xee   : >> { %v281_v38 = vsel %vm280_vm3, %v277_v33, %v270_v36 }
  0xef   : >> { %v299_v40 = vpop.permute.xlu1 %298  ;;  %v288_v41 = vpop.permute.xlu0 %287 }
  0xf0   : >> { %v292_v43 = vsel %vm291_vm4, %v288_v41, %v281_v38 }
  0xf1   : >> { %v303_v46 = vsel %vm302_vm5, %v299_v40, %v292_v43 }
  0xf2   : > { %232 = sbr.rel (!%p229_p7) target bundleno = 100 (0x64), region = 94 }
  0xf3   : >> { %v321_v44 = vpop.permute.xlu1 %320  ;;  %v310_v45 = vpop.permute.xlu0 %309 }
  0xf4   : >> { %v314_v47 = vsel %vm313_vm6, %v310_v45, %v303_v46 }
  0xf5   : >> { %v325_v48 = vsel %vm324_vm7, %v321_v44, %v314_v47  }
  0xf6   : >> { %v1033_v2 = vmov %v325_v48  ;;  %v1034_v5 = vmov (%p229_p7), %v325_v48 }
  0xf7 PF: > { %326 = vst [vmem:[%s916_s8] sm:$0xff] %v747_v5  ;;  %v747_v5 = vphi %v1032_v5, %v1034_v5  }
  0xf8 PF: > { %s456_s20 = sshll.u32 %s727_s24, 7  ;;  %s341_s7 = sshll.u32 %s916_s8, 4  ;;  %s342_s7 = int_to_ptr.vmem [resolvable:$true] %s341_s7 }
  0xf9   : > { %s339_s28 = scalar_lea.hbm %s1019_s4, %s456_s20  ;;  %s328_s9 = scalar_lea.sflag [#allocation7], %s903_s18 }
  0xfa   : > { %s637_s10 = scalar_lea.vmem %s342_s7, 128  ;;  %s756_s29 = smov [#allocation10]  }
  0xfb   : > { %p638_p8 = scmp.ne.s32.totalorder %s342_s7, %s637_s10  ;;  %s641_s5 = sshll.u32 %s756_s29, 4  ;;  %s642_s5 = int_to_ptr.vmem [resolvable:$false] %s641_s5 }
  0xfc   : > { %s643_s12 = scalar_lea.vmem %s642_s5, 256  ;;  %p644_p11 = scmp.lt.s32.totalorder %s342_s7, %s642_s5 }
  0xfd   : > { %p639_p10 = pnand %p638_p8, %p875_p4  ;;  %p645_p9 = scmp.lt.s32.totalorder %s643_s12, %s637_s10 }
  0xff   : > { %p640_p12 = pneg %p639_p10  ;;  %p646_p0 = por %p645_p9, %p644_p11 }
 0x101   : > { %p647_p2 = pnand %p646_p0, %p640_p12 }
 0x103   : > { %650 = shalt.err (!%p647_p2)
}
 0x104   : > { %s651_s24 = scalar_lea.hbm %s339_s28, 128  ;;  %s655_s13 = scalar_lea.hbm %s1019_s4, 256 }
 0x105   : > { %p652_p3 = scmp.ne.s32.totalorder %s339_s28, %s651_s24  ;;  %p656_p5 = scmp.lt.s32.totalorder %s339_s28, %s1019_s4 }
 0x106   : > { %p657_p6 = scmp.lt.s32.totalorder %s655_s13, %s651_s24 }
 0x107   : > { %p653_p13 = pnand %p652_p3, %p875_p4 }
 0x108   : > { %p658_p7 = por %p657_p6, %p656_p5 }
 0x109   : > { %p654_p1 = pneg %p653_p13 }
 0x10b   : > { %p659_p8 = pnand %p658_p7, %p654_p1 }
 0x10d   : > { %662 = shalt.err (!%p659_p8)
}
 0x10e   : > { %465 = dma.vmem_to_hbm [thread:$0]  (%p875_p4), %s342_s7, 128, %s339_s28, %s328_s9  }
 0x10f PF: > { %s353_s15 = sand.u32 1, %s715_s0   ;;  %p1035_p10 = scmp.ne.s32.totalorder %s1025_s6, 0 }
 0x110   : > { %p1036_p12 = scmp.ge.s32.totalorder %s735_s26, 2  ;;  %s354_s16 = scalar_lea.sflag [#allocation7], %s353_s15 }
 0x112   : > { %p476_p11 = pnand %p1036_p12, %p1035_p10 }
 0x114   : > { %p477_p9 = pneg %p476_p11 }
 0x116   : > { %710 = dma.done.wait (%p477_p9), %s354_s16, 128  }
 0x117   : > { %712 = vsyncadd (%p477_p9), %s354_s16, 4294967168  ;;  %s29_s26 = sadd.s32 1, %s735_s26   ;;  %s1037_s0 = smov %s719_s1 }
 0x118   : > { %p26_p0 = scmp.ge.s32.totalorder %s29_s26, 4   ;;  %s1038_s1 = smov %s723_s23 }
 0x119   : > { %s1039_s23 = smov %s884_s27  ;;  %s1040_s24 = smov %s731_s25 }
 0x11a   : > { %s1041_s25 = smov %s1043_s11  ;;  %28 = sbr.rel (!%p26_p0) target bundleno = 23 (0x17), region = 105 }
 0x11f   :  { %359 = vsyncpa [#allocation6], 1 }
 0x120   :  { %361 = vsyncpa [#allocation6 + $0x1], 1 }
 0x121   :  { %362 = vsyncpa [#allocation9], 1 }
 0x122   :  { %363 = vsyncpa [#allocation7], 1 }
 0x123   :  { %365 = vsyncpa [#allocation7 + $0x1], 1 }

// kernel: tpu_custom_call.1
= control target key start
LH: loop header
LB: loop body
LE: loop exit
PB: predicated region body
PF: predicated region fallthrough
CT: control target
= control target key end

     0   :  { %s749_s15 = smov [#allocation3]   ;;  %s1016_s0 = inlined_call_operand.hbm [shape: s32[2], index: 0, kind: input, shape index: {}]   ;;  %s1017_s2 = inlined_call_operand.hbm [shape: s32[16,128], index: 2, kind: input, shape index: {}]   ;;  %s1018_s3 = inlined_call_operand.hbm [shape: f32[4,8,128], index: 3, kind: input, shape index: {}]   ;;  %s1019_s4 = inlined_call_operand.hbm [shape: f32[16,128], index: 4, kind: output, shape index: {}]   ;;  %s1020_s1 = inlined_call_operand.vmem [shape: s32[2], index: 1, kind: input, shape index: {}]  }
   0x1   :  { %10 = dma.hbm_to_smem %s1016_s0, 16, %s749_s15, [#allocation2] }
   0x2   :  { %s11_s20 = sshll.u32 %s1020_s1, 4  ;;  %s12_s20 = int_to_ptr.vmem [resolvable:$true] %s11_s20 }
   0x3   :  { %s571_s21 = scalar_lea.vmem %s12_s20, 16  ;;  %p576_p1 = scmp.lt.s32.totalorder %s12_s20, %s12_s20 }
   0x4   :  { %p572_p0 = scmp.ne.s32.totalorder %s12_s20, %s571_s21  ;;  %p577_p2 = scmp.lt.s32.totalorder %s571_s21, %s571_s21 }
   0x6   :  { %p578_p3 = por %p577_p2, %p576_p1 }
   0x8   :  { %p579_p4 = pnand %p578_p3, %p572_p0 }
   0xa   :  { %582 = shalt.err (!%p579_p4)  }
   0xb   :  { %s750_s22 = smov [#allocation4]  }
   0xc   :  { %14 = dma.vmem_to_smem %s12_s20, 16, %s750_s22, [#allocation2] }
   0xd   :  { %699 = dma.done.wait [#allocation2], 32 }
   0xe   :  { %700 = vsyncadd [#allocation2], 4294967264 }
   0xf   :  { %16 = sfence }
  0x10   :  { %17 = vsyncpa [#allocation6], 0 }
  0x11   :  { %19 = vsyncpa [#allocation6 + $0x1], 0 }
  0x12   :  { %20 = vsyncpa [#allocation9], 0 }
  0x13   :  { %21 = vsyncpa [#allocation7], 0 }
  0x14   :  { %23 = vsyncpa [#allocation7 + $0x1], 0  ;;  %s788_s0 = smov 0   ;;  %s790_s1 = smov 0  }
  0x15   :  { %s792_s23 = smov 0   ;;  %s794_s24 = smov 0  }
  0x16   :  { %s796_s25 = smov 0   ;;  %s798_s26 = smov 0  }
  0x17 LB: > { %s441_s27 = sadd.s32 4294967295, %s735_s26   ;;  %s442_s28 = sadd.s32 4294967294, %s735_s26   ;;  %s735_s26 = sphi %s798_s26, %s29_s26   ;;  %s731_s25 = sphi %s796_s25, %s1041_s25   ;;  %s727_s24 = sphi %s794_s24, %s1040_s24   ;;  %s723_s23 = sphi %s792_s23, %s1039_s23   ;;  %s719_s1 = sphi %s790_s1, %s1038_s1   ;;  %s715_s0 = sphi %s788_s0, %s1037_s0  }
  0x18   : > { %p61_p5 = scmp.ne.s32.totalorder %s719_s1, %s715_s0  ;;  %p822_p6 = scmp.eq.s32.totalorder %s441_s27, 0 }
  0x19   : > { %p826_p7 = scmp.eq.s32.totalorder %s441_s27, 1  ;;  %p117_p8 = scmp.eq.s32.totalorder %s442_s28, 1 }
  0x1a   : > { %p832_p9 = por %p822_p6, %p61_p5  ;;  %p443_p10 = scmp.ge.s32.totalorder %s735_s26, 1 }
  0x1b   : > { %p837_p11 = por %p117_p8, %p61_p5  ;;  %p124_p12 = scmp.lt.s32.totalorder %s735_s26, 3 }
  0x1c   : > { %s1024_s5 = scalar_select %p832_p9, 1, 0 }
  0x1d   : > { %s1025_s6 = scalar_select %p837_p11, 1, 0 }
  0x1e   : > { %p842_p13 = pnand %p443_p10, %p124_p12  ;;  %s751_s8 = smov [#allocation8]  }
  0x1f   : > { %s139_s9 = sshll.u32 %s751_s8, 4  ;;  %s41_s11 = sadd.s32 1, %s731_s25  ;;  %s140_s9 = int_to_ptr.vmem [resolvable:$true] %s139_s9 }
  0x20   : > { %p467_p0 = pneg %p842_p13  ;;  %s594_s12 = scalar_lea.vmem %s140_s9, 512 }
  0x21   : > { %p595_p4 = scmp.ne.s32.totalorder %s140_s9, %s594_s12  ;;  %p602_p10 = scmp.lt.s32.totalorder %s140_s9, %s140_s9 }
  0x22   : > { %p851_p2 = pnand %p467_p0, %p822_p6  ;;  %p603_p12 = scmp.lt.s32.totalorder %s594_s12, %s594_s12 }
  0x24   : > { %p585_p3 = pneg %p851_p2  ;;  %p604_p11 = por %p603_p12, %p602_p10 }
  0x26   : > { %p597_p5 = pnand %p595_p4, %p585_p3 }
  0x28   : > { %p598_p8 = pneg %p597_p5 }
  0x2a   : > { %p605_p9 = pnand %p604_p11, %p598_p8 }
  0x2c   : > { %608 = shalt.err (!%p605_p9)
}
  0x2d   : > { %s752_s13 = smov 128   ;;  %s753_s14 = smov 8  }
  0x2e   : > { %470 = dma.hbm_to_vmem [thread:$0]  (!%p851_p2), %s1018_s3, 512, %s140_s9, [#allocation9], %s752_s13, %s752_s13, %s753_s14  }
  0x2f   : > { %p43_p11 = scmp.ge.s32.totalorder %s41_s11, 2  ;;  %s48_s17 = sadd.s32 1, %s723_s23 }
  0x30   : > { %p55_p9 = scmp.ne.s32.totalorder %s723_s23, %s719_s1  ;;  %p56_p0 = scmp.eq.s32.totalorder %s735_s26, 0 }
  0x31   : > { %s1043_s11 = smov (%p43_p11, %s41_s11), 0  ;;  %p480_p5 = scmp.lt.s32.totalorder %s735_s26, 2 }
  0x32   : > { %p869_p3 = por %p56_p0, %p55_p9  ;;  %p875_p4 = por %p826_p7, %p55_p9 }
  0x33   : > { %s45_s20 = ssub.s32 %s731_s25, %s1043_s11  ;;  %s153_s21 = sand.u32 1, %s723_s23  }
  0x34   : > { %p46_p2 = scmp.eq.s32.totalorder %s45_s20, 0  ;;  %s446_s22 = sshll.u32 %s153_s21, 3 }
  0x35   : > { %s447_s28 = sshll.u32 %s731_s25, 7  ;;  %s157_s12 = scalar_lea.vmem [#allocation5], %s446_s22 }
  0x36   : > { %s884_s27 = scalar_select %p46_p2, %s723_s23, %s48_s17  }
  0x37   : > { %s162_s10 = scalar_lea.hbm %s1017_s2, %s447_s28  ;;  %s164_s13 = sshll.u32 %s157_s12, 4  ;;  %s165_s13 = int_to_ptr.vmem [resolvable:$true] %s164_s13 }
  0x38   : > { %p892_p7 = pnand %p480_p5, %p869_p3  ;;  %s154_s14 = scalar_lea.sflag [#allocation6], %s153_s21 }
  0x39   : > { %s622_s15 = scalar_lea.vmem %s165_s13, 128  ;;  %s754_s16 = smov [#allocation5]  }
  0x3a   : > { %p611_p8 = pneg %p892_p7  ;;  %p623_p10 = scmp.ne.s32.totalorder %s165_s13, %s622_s15 }
  0x3b   : > { %s627_s17 = sshll.u32 %s754_s16, 4  ;;  %s628_s17 = int_to_ptr.vmem [resolvable:$false] %s627_s17 }
  0x3c   : > { %p625_p12 = pnand %p623_p10, %p611_p8  ;;  %s629_s20 = scalar_lea.vmem %s628_s17, 256 }
  0x3d   : > { %p630_p9 = scmp.lt.s32.totalorder %s165_s13, %s628_s17  ;;  %p631_p0 = scmp.lt.s32.totalorder %s629_s20, %s622_s15 }
  0x3e   : > { %p626_p11 = pneg %p625_p12 }
  0x3f   : > { %p632_p2 = por %p631_p0, %p630_p9 }
  0x41   : > { %p633_p1 = pnand %p632_p2, %p626_p11 }
  0x43   : > { %636 = shalt.err (!%p633_p1)
}
  0x44   : > { %474 = dma.hbm_to_vmem [thread:$0]  (!%p892_p7), %s162_s10, 128, %s165_s13, %s154_s14  }
  0x45   : > { %173 = sbr.rel (%p842_p13) target bundleno = 271 (0x10f), region = 28  ;;  %s903_s18 = sand.u32 (!%p842_p13), 1, %s719_s1  }
  0x46   : > { %s449_s21 = sshll.u32 (!%p842_p13), %s903_s18, 3  ;;  %s176_s22 = scalar_lea.sflag (!%p842_p13), [#allocation6], %s903_s18 }
  0x47   : > { %s179_s28 = scalar_lea.vmem (!%p842_p13), [#allocation5], %s449_s21  ;;  %p1031_p3 = scmp.ne.s32.totalorder (!%p842_p13), %s1024_s5, 0 }
  0x4a   : > { %702 = dma.done.wait (%p1031_p3), %s176_s22, 128  }
  0x4b   : > { %704 = vsyncadd (%p1031_p3), %s176_s22, 4294967168 }
  0x4c   : > { %706 = dma.done.wait (%p822_p6), [#allocation9], 512  }
  0x4d   : > { %708 = vsyncadd (%p822_p6), [#allocation9], 4294966784  ;;  %s211_s7 = sld [smem:[#allocation3 + %s727_s24]]  ;;  %s916_s8 = scalar_lea.vmem [#allocation10], %s449_s21  ;;  %v755_v0 = vmov 0.0  }
  0x4e   : > { %209 = vst [vmem:[%s916_s8] sm:$0xff] %v755_v0  ;;  %s214_s9 = sld [smem:[#allocation4 + %s727_s24]] }
  0x53   : > { %p212_p13 = scmp.gt.s32.totalorder %s211_s7, 0 }
  0x54   : > { %s215_s10 = sadd.s32 1, %s214_s9 }
  0x55   : > { %s1045_s7 = smov (!%p212_p13, %s211_s7), 0  ;;  %p217_p1 = scmp.lt.s32.totalorder %s215_s10, 4 }
  0x57   : > { %s1047_s10 = smov (!%p217_p1, %s215_s10), 4 }
  0x58   : > { %p452_p5 = scmp.le.s32.totalorder %s1047_s10, %s1045_s7 }
  0x59   : > { %p393_p6 = scmp.ge.s32.totalorder (!%p452_p5), %s1045_s7, %s1047_s10 }
  0x5a   : > { %222 = sbr.rel (%p452_p5) target bundleno = 248 (0xf8), region = 44 }
  0x5f   : > { %v923_v1 = vld [vmem:[%s179_s28] sm:$0xff]  ;;  %v226_v2 = vld [vmem:[%s916_s8] sm:$0xff]   ;;  %395 = sbr.rel (%p393_p6) target bundleno = 247 (0xf7), region = 88 }
  0x60   : > { %v224_v3 = vand.u32 127, %v923_v1  ;;  %v928_v4 = vshra.s32 %v923_v1, 7  ;;  %v1032_v5 = vmov %v226_v2 }
  0x64 LB: >> { %562 = vset.pattern.permute.xlu1 %v224_v3  ;;  %561 = vset.pattern.permute.xlu0 %v224_v3  ;;  %v238_v6 = vlaneseq  ;;  %s946_s29 = sshll.u32 %s743_s7, 3  ;;  %s230_s7 = sadd.s32 1, %s743_s7   ;;  %s743_s7 = sphi %s1045_s7, %s230_s7   ;;  %v739_v2 = vphi %v226_v2, %v1033_v2  }
  0x65   : >> { %s236_s5 = scalar_lea.vmem [#allocation8], %s946_s29  ;;  %s256_s12 = sadd.s32 1, %s946_s29  ;;  %v246_v25 = vstv %s946_s29 }
  0x66   : >> { %v239_v7 = vshrl.u32 %v238_v6, 7  ;;  %v237_v8 = vld [vmem:[%s236_s5] sm:$0xff]  ;;  %s267_s13 = sadd.s32 2, %s946_s29  ;;  %s278_s30 = sadd.s32 3, %s946_s29  ;;  %v257_v26 = vstv %s256_s12  ;;  %vm247_vm0 = vcmp.eq.s32.totalorder %v928_v4, %v246_v25 }
  0x67   : >> { %v268_v29 = vstv %s267_s13  ;;  %s289_s14 = sadd.s32 4, %s946_s29  ;;  %v279_v30 = vstv %s278_s30  ;;  %vm258_vm1 = vcmp.eq.s32.totalorder %v928_v4, %v257_v26  ;;  %s300_s15 = sadd.s32 5, %s946_s29 }
  0x68   : >> { %v262_v9 = vsub.s32 2, %v239_v7  ;;  %v240_v10 = vsub.s32 0, %v239_v7  ;;  %v273_v11 = vsub.s32 3, %v239_v7  ;;  %v251_v12 = vsub.s32 1, %v239_v7  ;;  %s311_s16 = sadd.s32 6, %s946_s29  ;;  %s322_s17 = sadd.s32 7, %s946_s29 }
  0x69   : >> { %v295_v17 = vsub.s32 5, %v239_v7  ;;  %v284_v18 = vsub.s32 4, %v239_v7  ;;  %v317_v21 = vsub.s32 7, %v239_v7  ;;  %v306_v22 = vsub.s32 6, %v239_v7  ;;  %p229_p7 = scmp.ge.s32.totalorder %s230_s7, %s1047_s10 }
  0x6a   : >> { %v263_v13 = vrot.slane %v237_v8, %v262_v9  ;;  %v241_v14 = vrot.slane %v237_v8, %v240_v10  ;;  %v274_v15 = vrot.slane %v237_v8, %v273_v11  ;;  %v252_v16 = vrot.slane %v237_v8, %v251_v12 }
  0x6b   : >> { %v296_v19 = vrot.slane %v237_v8, %v295_v17  ;;  %v285_v20 = vrot.slane %v237_v8, %v284_v18  ;;  %v318_v23 = vrot.slane %v237_v8, %v317_v21  ;;  %v307_v24 = vrot.slane %v237_v8, %v306_v22 }
  0x6c   : >> { %265 = vperm.xlu1 %562, %v263_v13   ;;  %243 = vperm.xlu0 %561, %v241_v14   ;;  %vm269_vm2 = vcmp.eq.s32.totalorder %v928_v4, %v268_v29  ;;  %v290_v31 = vstv %s289_s14  ;;  %vm280_vm3 = vcmp.eq.s32.totalorder %v928_v4, %v279_v30  ;;  %v301_v37 = vstv %s300_s15 }
  0x6d   : >> { %vm291_vm4 = vcmp.eq.s32.totalorder %v928_v4, %v290_v31  ;;  %v312_v39 = vstv %s311_s16  ;;  %v323_v42 = vstv %s322_s17  ;;  %vm302_vm5 = vcmp.eq.s32.totalorder %v928_v4, %v301_v37 }
  0x6e   : >> { %vm313_vm6 = vcmp.eq.s32.totalorder %v928_v4, %v312_v39  ;;  %vm324_vm7 = vcmp.eq.s32.totalorder %v928_v4, %v323_v42 }
  0x70   : >> { %276 = vperm.xlu1 %562, %v274_v15   ;;  %254 = vperm.xlu0 %561, %v252_v16  }
  0x74   : >> { %298 = vperm.xlu1 %562, %v296_v19   ;;  %287 = vperm.xlu0 %561, %v285_v20  }
  0x78   : >> { %320 = vperm.xlu1 %562, %v318_v23   ;;  %309 = vperm.xlu0 %561, %v307_v24  }
  0xe7   : >> { %v266_v27 = vpop.permute.xlu1 %265  ;;  %v244_v28 = vpop.permute.xlu0 %243 }
  0xe8   : >> { %v248_v32 = vsel %vm247_vm0, %v244_v28, %v739_v2 }
  0xeb   : >> { %v277_v33 = vpop.permute.xlu1 %276  ;;  %v255_v34 = vpop.permute.xlu0 %254 }
  0xec   : >> { %v259_v35 = vsel %vm258_vm1, %v255_v34, %v248_v32 }
  0xed   : >> { %v270_v36 = vsel %vm269_vm2, %v266_v27, %v259_v35 }
  0xee   : >> { %v281_v38 = vsel %vm280_vm3, %v277_v33, %v270_v36 }
  0xef   : >> { %v299_v40 = vpop.permute.xlu1 %298  ;;  %v288_v41 = vpop.permute.xlu0 %287 }
  0xf0   : >> { %v292_v43 = vsel %vm291_vm4, %v288_v41, %v281_v38 }
  0xf1   : >> { %v303_v46 = vsel %vm302_vm5, %v299_v40, %v292_v43 }
  0xf2   : > { %232 = sbr.rel (!%p229_p7) target bundleno = 100 (0x64), region = 94 }
  0xf3   : >> { %v321_v44 = vpop.permute.xlu1 %320  ;;  %v310_v45 = vpop.permute.xlu0 %309 }
  0xf4   : >> { %v314_v47 = vsel %vm313_vm6, %v310_v45, %v303_v46 }
  0xf5   : >> { %v325_v48 = vsel %vm324_vm7, %v321_v44, %v314_v47  }
  0xf6   : >> { %v1033_v2 = vmov %v325_v48  ;;  %v1034_v5 = vmov (%p229_p7), %v325_v48 }
  0xf7 PF: > { %326 = vst [vmem:[%s916_s8] sm:$0xff] %v747_v5  ;;  %v747_v5 = vphi %v1032_v5, %v1034_v5  }
  0xf8 PF: > { %s456_s20 = sshll.u32 %s727_s24, 7  ;;  %s341_s7 = sshll.u32 %s916_s8, 4  ;;  %s342_s7 = int_to_ptr.vmem [resolvable:$true] %s341_s7 }
  0xf9   : > { %s339_s28 = scalar_lea.hbm %s1019_s4, %s456_s20  ;;  %s328_s9 = scalar_lea.sflag [#allocation7], %s903_s18 }
  0xfa   : > { %s637_s10 = scalar_lea.vmem %s342_s7, 128  ;;  %s756_s29 = smov [#allocation10]  }
  0xfb   : > { %p638_p8 = scmp.ne.s32.totalorder %s342_s7, %s637_s10  ;;  %s641_s5 = sshll.u32 %s756_s29, 4  ;;  %s642_s5 = int_to_ptr.vmem [resolvable:$false] %s641_s5 }
  0xfc   : > { %s643_s12 = scalar_lea.vmem %s642_s5, 256  ;;  %p644_p11 = scmp.lt.s32.totalorder %s342_s7, %s642_s5 }
  0xfd   : > { %p639_p10 = pnand %p638_p8, %p875_p4  ;;  %p645_p9 = scmp.lt.s32.totalorder %s643_s12, %s637_s10 }
  0xff   : > { %p640_p12 = pneg %p639_p10  ;;  %p646_p0 = por %p645_p9, %p644_p11 }
 0x101   : > { %p647_p2 = pnand %p646_p0, %p640_p12 }
 0x103   : > { %650 = shalt.err (!%p647_p2)
}
 0x104   : > { %s651_s24 = scalar_lea.hbm %s339_s28, 128  ;;  %s655_s13 = scalar_lea.hbm %s1019_s4, 256 }
 0x105   : > { %p652_p3 = scmp.ne.s32.totalorder %s339_s28, %s651_s24  ;;  %p656_p5 = scmp.lt.s32.totalorder %s339_s28, %s1019_s4 }
 0x106   : > { %p657_p6 = scmp.lt.s32.totalorder %s655_s13, %s651_s24 }
 0x107   : > { %p653_p13 = pnand %p652_p3, %p875_p4 }
 0x108   : > { %p658_p7 = por %p657_p6, %p656_p5 }
 0x109   : > { %p654_p1 = pneg %p653_p13 }
 0x10b   : > { %p659_p8 = pnand %p658_p7, %p654_p1 }
 0x10d   : > { %662 = shalt.err (!%p659_p8)
}
 0x10e   : > { %465 = dma.vmem_to_hbm [thread:$0]  (%p875_p4), %s342_s7, 128, %s339_s28, %s328_s9  }
 0x10f PF: > { %s353_s15 = sand.u32 1, %s715_s0   ;;  %p1035_p10 = scmp.ne.s32.totalorder %s1025_s6, 0 }
 0x110   : > { %p1036_p12 = scmp.ge.s32.totalorder %s735_s26, 2  ;;  %s354_s16 = scalar_lea.sflag [#allocation7], %s353_s15 }
 0x112   : > { %p476_p11 = pnand %p1036_p12, %p1035_p10 }
 0x114   : > { %p477_p9 = pneg %p476_p11 }
 0x116   : > { %710 = dma.done.wait (%p477_p9), %s354_s16, 128  }
 0x117   : > { %712 = vsyncadd (%p477_p9), %s354_s16, 4294967168  ;;  %s29_s26 = sadd.s32 1, %s735_s26   ;;  %s1037_s0 = smov %s719_s1 }
 0x118   : > { %p26_p0 = scmp.ge.s32.totalorder %s29_s26, 4   ;;  %s1038_s1 = smov %s723_s23 }
 0x119   : > { %s1039_s23 = smov %s884_s27  ;;  %s1040_s24 = smov %s731_s25 }
 0x11a   : > { %s1041_s25 = smov %s1043_s11  ;;  %28 = sbr.rel (!%p26_p0) target bundleno = 23 (0x17), region = 105 }
 0x11f   :  { %359 = vsyncpa [#allocation6], 1 }
 0x120   :  { %361 = vsyncpa [#allocation6 + $0x1], 1 }
 0x121   :  { %362 = vsyncpa [#allocation9], 1 }
 0x122   :  { %363 = vsyncpa [#allocation7], 1 }
 0x123   :  { %365 = vsyncpa [#allocation7 + $0x1], 1 }

</bundles_post_ra>
